<compile_context>
chip_gen: v7x
topology: tpu7x:2x2x1
jax: 0.10.0
libtpu: 0.0.40
codegen_flags: <defaults>
</compile_context>

<pallas_src>
import functools

import jax
import jax.numpy as jnp
from jax import lax
from jax.experimental import pallas as pl
from jax.experimental.pallas import tpu as pltpu

_LANE = 128
_SUBLANE = 8
_EPS = 1e-5
_MAX_TK = 512        # K-tile cap (lane multiple)
_MAX_TB = 512        # batch-tile cap
_VMEM_BUDGET = 24 * 1024 * 1024


def _round_up(x, m):
    return (x + m - 1) // m * m


def _choose_batch_tile(B, tk, O_pad, x_bytes, o_bytes, w_bytes, budget_bytes):
    """Largest multiple-of-8 batch tile whose double-buffered footprint fits."""
    # weight K-slab + bias (x2 buffers) are batch-tile independent.
    fixed = 2 * (tk * O_pad + O_pad) * w_bytes
    tb = _round_up(min(_round_up(B, _SUBLANE), _MAX_TB), _SUBLANE)
    while tb > _SUBLANE:
        need = (fixed
                + 2 * tb * (tk * x_bytes + O_pad * o_bytes)   # x tile + out tile (x2)
                + tb * O_pad * 4)                              # f32 accumulator scratch
        if need <= budget_bytes:
            break
        tb -= _SUBLANE
    return max(tb, _SUBLANE)


def _block_kernel(x_ref, w_ref, b_ref, alpha_ref, o_ref, acc_ref, *, n_feat, eps):
    """Fused Linear + InstanceNorm1d + PReLU, K-tiled with an f32 accumulator.

    Grid: (batch tiles, K tiles)  -- K is the trailing "arbitrary" axis.

    x_ref:     (TB, TK)      VMEM (zero-padded)
    w_ref:     (TK, O_pad)   VMEM (zero-padded, y = x @ w + b)
    b_ref:     (1, O_pad)    VMEM (zero-padded)
    alpha_ref: (1,)          SMEM (scalar PReLU slope)
    o_ref:     (TB, O_pad)   VMEM (lane-dense; padding sliced off outside)
    acc_ref:   (TB, O_pad)   VMEM f32 scratch accumulator
    """
    k = pl.program_id(1)

    @pl.when(k == 0)
    def _():
        acc_ref[...] = jnp.zeros_like(acc_ref)

    # Linear on the MXU with f32 accumulation; operands stay in native dtype.
    acc_ref[...] += jnp.dot(x_ref[...], w_ref[...],
                            preferred_element_type=jnp.float32)

    @pl.when(k == pl.num_programs(1) - 1)
    def _():
        h = acc_ref[...] + b_ref[...]

        # InstanceNorm1d over the true feature axis in a single pass over h.
        # Padded feature columns of h are exactly zero (zero-padded W and b),
        # so the padded-axis sums equal the true sums; divide by the true
        # feature count.
        inv_n = jnp.float32(1.0 / n_feat)
        s1 = jnp.sum(h, axis=-1, keepdims=True)
        s2 = jnp.sum(h * h, axis=-1, keepdims=True)
        mean = s1 * inv_n
        var = jnp.maximum(s2 * inv_n - mean * mean, 0.0)
        n = (h - mean) * lax.rsqrt(var + eps)

        # PReLU with a single shared slope alpha.
        alpha = alpha_ref[0]
        o_ref[...] = jnp.where(n >= 0, n, alpha * n).astype(o_ref.dtype)


def block_forward(x, w, b, alpha, *, out_dtype=jnp.float32):
    """Block forward.  x: (B, I); w: (I, O); b: (O,); alpha: scalar -> (B, O)."""
    B, I = x.shape
    O = w.shape[1]

    # Lane-dense feature axes; K tile divides I_pad by construction.
    tk = min(_MAX_TK, _round_up(I, _LANE))
    I_pad = _round_up(I, tk)
    O_pad = _round_up(O, _LANE)

    x_bytes = jnp.dtype(x.dtype).itemsize
    w_bytes = jnp.dtype(w.dtype).itemsize
    o_bytes = jnp.dtype(out_dtype).itemsize

    tb = _choose_batch_tile(B, tk, O_pad, x_bytes, o_bytes, w_bytes, _VMEM_BUDGET)
    B_pad = _round_up(B, tb)
    grid = (B_pad // tb, I_pad // tk)

    # Zero-pad operands once in the wrapper (outside the kernel).
    x_p = jnp.pad(x, ((0, B_pad - B), (0, I_pad - I)))
    w_p = jnp.pad(w, ((0, I_pad - I), (0, O_pad - O)))
    b_p = jnp.pad(b, (0, O_pad - O)).reshape(1, O_pad)
    alpha1 = jnp.asarray(alpha, jnp.float32).reshape(1)

    kernel = functools.partial(_block_kernel, n_feat=float(O), eps=_EPS)

    out_p = pl.pallas_call(
        kernel,
        out_shape=jax.ShapeDtypeStruct((B_pad, O_pad), out_dtype),
        grid_spec=pltpu.PrefetchScalarGridSpec(
            num_scalar_prefetch=0,
            grid=grid,
            in_specs=[
                pl.BlockSpec((tb, tk), lambda i, k: (i, k)),       # x tile
                pl.BlockSpec((tk, O_pad), lambda i, k: (k, 0)),    # weight K-slab
                pl.BlockSpec((1, O_pad), lambda i, k: (0, 0)),     # bias
                pl.BlockSpec(memory_space=pltpu.SMEM),             # PReLU alpha
            ],
            out_specs=pl.BlockSpec((tb, O_pad), lambda i, k: (i, 0)),
            scratch_shapes=[pltpu.VMEM((tb, O_pad), jnp.float32)],
        ),
        compiler_params=pltpu.CompilerParams(
            dimension_semantics=("parallel", "arbitrary"),
            vmem_limit_bytes=32 * 1024 * 1024,
        ),
    )(x_p, w_p, b_p, alpha1)

    # Slice off the batch / lane padding.
    return out_p[:B, :O]


def reference_forward(x, w, b, alpha):
    """Pure-JAX reference mirroring the PyTorch semantics."""
    h = x @ w + b[None, :]
    mean = jnp.mean(h, axis=-1, keepdims=True)
    var = jnp.mean(jnp.square(h - mean), axis=-1, keepdims=True)
    n = (h - mean) / jnp.sqrt(var + 1e-5)
    return jnp.where(n >= 0, n, alpha * n)


if __name__ == "__main__":
    # Small shapes consistent with the module: batch=8, in=32, out=32.
    B, I, O = 8, 32, 32

    key = jax.random.PRNGKey(0)
    kx, kw, kb = jax.random.split(key, 3)

    x = jax.random.normal(kx, (B, I), dtype=jnp.float32)

    # Deterministic parameter init (uniform like nn.Linear's default range).
    bound = 1.0 / jnp.sqrt(jnp.float32(I))
    w = jax.random.uniform(kw, (I, O), jnp.float32, -bound, bound)  # (in, out)
    b = jax.random.uniform(kb, (O,), jnp.float32, -bound, bound)
    alpha = jnp.float32(0.25)  # PReLU default init

    out = block_forward(x, w, b, alpha)
    out = jax.block_until_ready(out)

    ref = reference_forward(x, w, b, alpha)
    assert out.shape == (B, O)
    assert jnp.allclose(out, ref, atol=1e-4, rtol=1e-4), "mismatch vs reference"

    print("KERNEL_OK")
</pallas_src>

<mosaic_0001>
module attributes {stable_mosaic.version = 11 : i64} {
  func.func @_block_kernel(%arg0: i32, %arg1: i32, %arg2: memref<8x128xf32, #tpu.memory_space<vmem>>, %arg3: memref<128x128xf32, #tpu.memory_space<vmem>>, %arg4: memref<1x128xf32, #tpu.memory_space<vmem>>, %arg5: memref<1xf32, #tpu.memory_space<smem>>, %arg6: memref<8x128xf32, #tpu.memory_space<vmem>>, %arg7: memref<8x128xf32, #tpu.memory_space<vmem>>) attributes {dimension_semantics = [#tpu.dimension_semantics<parallel>, #tpu.dimension_semantics<arbitrary>], iteration_bounds = array<i64: 1, 1>, scalar_prefetch = 0 : i64, scratch_operands = 1 : i64, tpu.core_type = #tpu.core_type<tc>, window_params = [{transform_indices = @transform_0, window_bounds = array<i64: 8, 128>}, {transform_indices = @transform_1, window_bounds = array<i64: 128, 128>}, {pipeline_mode = #tpu.pipeline_mode<synchronous>, transform_indices = @transform_2, window_bounds = array<i64: 1, 128>}, {transform_indices = @transform_3, window_bounds = array<i64: 1>}, {transform_indices = @transform_4, window_bounds = array<i64: 8, 128>}]} {
    %c0_i32 = arith.constant 0 : i32
    %0 = arith.cmpi eq, %arg1, %c0_i32 : i32
    %1 = arith.extui %0 : i1 to i32
    %c0_i32_0 = arith.constant 0 : i32
    %2 = arith.cmpi ne, %1, %c0_i32_0 : i32
    scf.if %2 {
      %cst_10 = arith.constant 0.000000e+00 : f32
      %12 = vector.broadcast %cst_10 : f32 to vector<8x128xf32>
      %c0_11 = arith.constant 0 : index
      %c0_12 = arith.constant 0 : index
      %13 = vector.load %arg7[%c0_11, %c0_12] : memref<8x128xf32, #tpu.memory_space<vmem>>, vector<8x128xf32>
      tpu.vector_store %arg7[%c0_11, %c0_12], %12 {strides = array<i32>} : memref<8x128xf32, #tpu.memory_space<vmem>>, vector<8x128xf32>,
    } else {
    }
    %c0 = arith.constant 0 : index
    %c0_1 = arith.constant 0 : index
    %3 = vector.load %arg7[%c0, %c0_1] : memref<8x128xf32, #tpu.memory_space<vmem>>, vector<8x128xf32>
    %c0_2 = arith.constant 0 : index
    %c0_3 = arith.constant 0 : index
    %4 = vector.load %arg2[%c0_2, %c0_3] : memref<8x128xf32, #tpu.memory_space<vmem>>, vector<8x128xf32>
    %c0_4 = arith.constant 0 : index
    %c0_5 = arith.constant 0 : index
    %5 = vector.load %arg3[%c0_4, %c0_5] : memref<128x128xf32, #tpu.memory_space<vmem>>, vector<128x128xf32>
    %cst = arith.constant dense<0.000000e+00> : vector<8x128xf32>
    %6 = tpu.matmul %4, %5, %cst {dimension_numbers = #tpu.dot_dimension_numbers<[1], [0], [0], [1], [0, 0, 1, 1], [], []>} : vector<8x128xf32>, vector<128x128xf32>, vector<8x128xf32> -> vector<8x128xf32>
    %7 = arith.addf %3, %6 : vector<8x128xf32>
    %c0_6 = arith.constant 0 : index
    %c0_7 = arith.constant 0 : index
    %8 = vector.load %arg7[%c0_6, %c0_7] : memref<8x128xf32, #tpu.memory_space<vmem>>, vector<8x128xf32>
    tpu.vector_store %arg7[%c0_6, %c0_7], %7 {strides = array<i32>} : memref<8x128xf32, #tpu.memory_space<vmem>>, vector<8x128xf32>,
    %c0_i32_8 = arith.constant 0 : i32
    %9 = arith.cmpi eq, %arg1, %c0_i32_8 : i32
    %10 = arith.extui %9 : i1 to i32
    %c0_i32_9 = arith.constant 0 : i32
    %11 = arith.cmpi ne, %10, %c0_i32_9 : i32
    scf.if %11 {
      %c0_10 = arith.constant 0 : index
      %c0_11 = arith.constant 0 : index
      %12 = vector.load %arg7[%c0_10, %c0_11] : memref<8x128xf32, #tpu.memory_space<vmem>>, vector<8x128xf32>
      %c0_12 = arith.constant 0 : index
      %c0_13 = arith.constant 0 : index
      %13 = vector.load %arg4[%c0_12, %c0_13] : memref<1x128xf32, #tpu.memory_space<vmem>>, vector<1x128xf32>
      %14 = vector.broadcast %13 : vector<1x128xf32> to vector<8x128xf32>
      %15 = arith.addf %12, %14 : vector<8x128xf32>
      %cst_14 = arith.constant dense<0.000000e+00> : vector<8xf32>
      %16 = vector.multi_reduction <add>, %15, %cst_14 [1] : vector<8x128xf32> to vector<8xf32>
      %17 = vector.shape_cast %16 : vector<8xf32> to vector<8x1xf32>
      %18 = arith.mulf %15, %15 : vector<8x128xf32>
      %cst_15 = arith.constant dense<0.000000e+00> : vector<8xf32>
      %19 = vector.multi_reduction <add>, %18, %cst_15 [1] : vector<8x128xf32> to vector<8xf32>
      %20 = vector.shape_cast %19 : vector<8xf32> to vector<8x1xf32>
      %cst_16 = arith.constant 3.125000e-02 : f32
      %21 = vector.broadcast %cst_16 : f32 to vector<8x1xf32>
      %22 = arith.mulf %17, %21 : vector<8x1xf32>
      %cst_17 = arith.constant 3.125000e-02 : f32
      %23 = vector.broadcast %cst_17 : f32 to vector<8x1xf32>
      %24 = arith.mulf %20, %23 : vector<8x1xf32>
      %25 = arith.mulf %22, %22 : vector<8x1xf32>
      %26 = arith.subf %24, %25 : vector<8x1xf32>
      %cst_18 = arith.constant 0.000000e+00 : f32
      %27 = vector.broadcast %cst_18 : f32 to vector<8x1xf32>
      %28 = arith.maximumf %26, %27 : vector<8x1xf32>
      %29 = vector.broadcast %22 : vector<8x1xf32> to vector<8x128xf32>
      %30 = arith.subf %15, %29 : vector<8x128xf32>
      %cst_19 = arith.constant 9.99999974E-6 : f32
      %31 = vector.broadcast %cst_19 : f32 to vector<8x1xf32>
      %32 = arith.addf %28, %31 : vector<8x1xf32>
      %33 = math.rsqrt %32 : vector<8x1xf32>
      %34 = vector.broadcast %33 : vector<8x1xf32> to vector<8x128xf32>
      %35 = arith.mulf %30, %34 : vector<8x128xf32>
      %c0_20 = arith.constant 0 : index
      %36 = memref.load %arg5[%c0_20] : memref<1xf32, #tpu.memory_space<smem>>
      %cst_21 = arith.constant 0.000000e+00 : f32
      %37 = vector.broadcast %cst_21 : f32 to vector<8x128xf32>
      %38 = arith.cmpf oge, %35, %37 : vector<8x128xf32>
      %39 = vector.broadcast %36 : f32 to vector<8x128xf32>
      %40 = arith.mulf %39, %35 : vector<8x128xf32>
      %41 = arith.select %38, %35, %40 : vector<8x128xi1>, vector<8x128xf32>
      %c0_22 = arith.constant 0 : index
      %c0_23 = arith.constant 0 : index
      %42 = vector.load %arg6[%c0_22, %c0_23] : memref<8x128xf32, #tpu.memory_space<vmem>>, vector<8x128xf32>
      tpu.vector_store %arg6[%c0_22, %c0_23], %41 {strides = array<i32>} : memref<8x128xf32, #tpu.memory_space<vmem>>, vector<8x128xf32>,
    } else {
    }
    return
  }
  func.func @transform_0(%arg0: i32, %arg1: i32) -> (i32, i32) {
    %c0_i32 = arith.constant 0 : i32
    return %arg0, %arg1 : i32, i32
  }
  func.func @transform_1(%arg0: i32, %arg1: i32) -> (i32, i32) {
    %c0_i32 = arith.constant 0 : i32
    %c0_i32_0 = arith.constant 0 : i32
    return %arg1, %c0_i32 : i32, i32
  }
  func.func @transform_2(%arg0: i32, %arg1: i32) -> (i32, i32) {
    %c0_i32 = arith.constant 0 : i32
    %c0_i32_0 = arith.constant 0 : i32
    %c0_i32_1 = arith.constant 0 : i32
    return %c0_i32, %c0_i32_0 : i32, i32
  }
  func.func @transform_3(%arg0: i32, %arg1: i32) -> i32 {
    %c0_i32 = arith.constant 0 : i32
    %c0_i32_0 = arith.constant 0 : i32
    return %c0_i32 : i32
  }
  func.func @transform_4(%arg0: i32, %arg1: i32) -> (i32, i32) {
    %c0_i32 = arith.constant 0 : i32
    %c0_i32_0 = arith.constant 0 : i32
    return %arg0, %c0_i32 : i32, i32
  }
}

</mosaic_0001>

<bundles_post_ra>
// kernel: tpu_custom_call.1
= control target key start
LH: loop header
LB: loop body
LE: loop exit
PB: predicated region body
PF: predicated region fallthrough
CT: control target
= control target key end

     0   :  { %10 = vsyncpa [#allocation5], 0  ;;  %s429_s0 = inlined_call_operand.hbm [shape: f32[8,128], index: 0, kind: input, shape index: {}]   ;;  %s430_s1 = inlined_call_operand.hbm [shape: f32[128,128], index: 1, kind: input, shape index: {}]   ;;  %s431_s2 = inlined_call_operand.vmem [shape: f32[1,128], index: 2, kind: input, shape index: {}]   ;;  %s432_s3 = inlined_call_operand.<no memory space> [shape: f32[1], index: 3, kind: input, shape index: {}]   ;;  %s433_s4 = inlined_call_operand.hbm [shape: f32[8,128], index: 4, kind: output, shape index: {}]  }
   0x1   :  { %11 = vsyncpa [#allocation8], 0 }
   0x2   :  { %12 = vsyncpa [#allocation6], 0  ;;  %s347_s15 = smov [#allocation4]   ;;  %s348_s17 = smov [#allocation7]  }
   0x3   :  { %s19_s16 = sshll.u32 %s347_s15, 4  ;;  %s28_s18 = sshll.u32 %s348_s17, 4  ;;  %s20_s16 = int_to_ptr.vmem [resolvable:$true] %s19_s16  ;;  %s380_s18 = int_to_ptr.vmem [resolvable:$true] %s28_s18 }
   0x4   :  { %s275_s21 = scalar_lea.hbm %s429_s0, 128 }
   0x5   :  { %p276_p0 = scmp.ne.s32.totalorder %s429_s0, %s275_s21  ;;  %p279_p1 = scmp.lt.u32.totalorder %s275_s21, %s429_s0 }
   0x7   :  { %p281_p2 = pnand %p279_p1, %p276_p0 }
   0x9   :  { %284 = shalt.err (!%p281_p2)
}
   0xa   :  { %s285_s26 = scalar_lea.vmem %s20_s16, 128  ;;  %p290_p4 = scmp.lt.s32.totalorder %s20_s16, %s20_s16 }
   0xb   :  { %p286_p3 = scmp.ne.s32.totalorder %s20_s16, %s285_s26  ;;  %p291_p5 = scmp.lt.s32.totalorder %s285_s26, %s285_s26 }
   0xd   :  { %p292_p6 = por %p291_p5, %p290_p4 }
   0xf   :  { %p293_p7 = pnand %p292_p6, %p286_p3 }
  0x11   :  { %296 = shalt.err (!%p293_p7)
}
  0x12   :  { %22 = dma.hbm_to_vmem [thread:$0]  %s429_s0, 128, %s20_s16, [#allocation5]  }
  0x13   :  { %s297_s5 = scalar_lea.hbm %s430_s1, 2048 }
  0x14   :  { %p298_p8 = scmp.ne.s32.totalorder %s430_s1, %s297_s5  ;;  %p301_p9 = scmp.lt.u32.totalorder %s297_s5, %s430_s1 }
  0x16   :  { %p303_p10 = pnand %p301_p9, %p298_p8 }
  0x18   :  { %306 = shalt.err (!%p303_p10)
}
  0x19   :  { %s307_s10 = scalar_lea.vmem %s380_s18, 2048  ;;  %p312_p12 = scmp.lt.s32.totalorder %s380_s18, %s380_s18 }
  0x1a   :  { %p308_p11 = scmp.ne.s32.totalorder %s380_s18, %s307_s10  ;;  %p313_p13 = scmp.lt.s32.totalorder %s307_s10, %s307_s10 }
  0x1c   :  { %p314_p0 = por %p313_p13, %p312_p12 }
  0x1e   :  { %p315_p1 = pnand %p314_p0, %p308_p11 }
  0x20   :  { %318 = shalt.err (!%p315_p1)
}
  0x21   :  { %s349_s0 = smov 128   ;;  %s350_s11 = smov 8  }
  0x22   :  { %34 = dma.hbm_to_vmem [thread:$0]  %s430_s1, 2048, %s380_s18, [#allocation8], %s349_s0, %s349_s0, %s350_s11  }
  0x23   :  { %341 = dma.done.wait [#allocation5], 128  }
  0x24   :  { %342 = vsyncadd [#allocation5], 4294967168 }
  0x25   :  { %343 = dma.done.wait [#allocation8], 2048  }
  0x26   :  { %344 = vsyncadd [#allocation8], 4294965248  ;;  %v351_v0 = vmov 0.0|0.0   ;;  %vm352_vm0 = vmmov 0   ;;  %v353_v1 = vmov 0.0   ;;  %v52_v2 = vld [vmem:[#allocation7] sm:$0xff]  ;;  %v168_v42 = vstv %s432_s3 }
  0x27   :  { %241 = vmatprep.subr.bf16.mxu0 %v351_v0  ;;  %238 = vmatprep.mubr.msk.f32.mxu0 %vm352_vm0, %v353_v1  ;;  %v53_v3 = vld [vmem:[#allocation7 + $0x8] sm:$0xff]  ;;  %v54_v4 = vld [vmem:[#allocation7 + $0x10] sm:$0xff]  ;;  %v55_v6 = vld [vmem:[#allocation7 + $0x18] sm:$0xff] }
  0x28   :  { %v242_v5 = vpack.c.bf16 %v53_v3, %v52_v2  ;;  %v245_v7 = vpack.c.bf16 %v55_v6, %v54_v4  ;;  %v56_v8 = vld [vmem:[#allocation7 + $0x20] sm:$0xff]  ;;  %v57_v9 = vld [vmem:[#allocation7 + $0x28] sm:$0xff]  ;;  %v58_v11 = vld [vmem:[#allocation7 + $0x30] sm:$0xff] }
  0x29   :  { %v248_v10 = vpack.c.bf16 %v57_v9, %v56_v8  ;;  %v59_v12 = vld [vmem:[#allocation7 + $0x38] sm:$0xff]  ;;  %v60_v14 = vld [vmem:[#allocation7 + $0x40] sm:$0xff]  ;;  %v61_v15 = vld [vmem:[#allocation7 + $0x48] sm:$0xff] }
  0x2a   :  { %243 = vmatpush3.bf16.msra.mxu0 %v242_v5  ;;  %v251_v13 = vpack.c.bf16 %v59_v12, %v58_v11  ;;  %v254_v16 = vpack.c.bf16 %v61_v15, %v60_v14  ;;  %v62_v17 = vld [vmem:[#allocation7 + $0x50] sm:$0xff]  ;;  %v63_v18 = vld [vmem:[#allocation7 + $0x58] sm:$0xff]  ;;  %v64_v20 = vld [vmem:[#allocation7 + $0x60] sm:$0xff] }
  0x2b   :  { %244 = vmatprep.subr.bf16.mxu0 %v351_v0  ;;  %v257_v19 = vpack.c.bf16 %v63_v18, %v62_v17  ;;  %v65_v21 = vld [vmem:[#allocation7 + $0x68] sm:$0xff]  ;;  %v66_v23 = vld [vmem:[#allocation7 + $0x70] sm:$0xff]  ;;  %v67_v24 = vld [vmem:[#allocation7 + $0x78] sm:$0xff] }
  0x2c   :  { %v260_v22 = vpack.c.bf16 %v65_v21, %v64_v20  ;;  %v263_v25 = vpack.c.bf16 %v67_v24, %v66_v23  ;;  %v51_v26 = vld [vmem:[#allocation4] sm:$0xff] }
  0x2d   :  { %v188_v27 = vld [vmem:[%s431_s2] ss:$0 sm:$0xff]  ;;  %s354_s2 = smov [#allocation9]  }
  0x2e   :  { %246 = vmatpush3.bf16.msra.mxu0 %v245_v7  ;;  %s178_s17 = sshll.u32 %s354_s2, 4  ;;  %s179_s17 = int_to_ptr.vmem [resolvable:$true] %s178_s17 }
  0x2f   :  { %247 = vmatprep.subr.bf16.mxu0 %v351_v0  ;;  %s319_s18 = scalar_lea.vmem %s179_s17, 128  ;;  %p324_p3 = scmp.lt.s32.totalorder %s179_s17, %s179_s17 }
  0x30   :  { %p320_p2 = scmp.ne.s32.totalorder %s179_s17, %s319_s18  ;;  %p325_p4 = scmp.lt.s32.totalorder %s319_s18, %s319_s18 }
  0x32   :  { %249 = vmatpush3.bf16.msra.mxu0 %v248_v10  ;;  %p326_p5 = por %p325_p4, %p324_p3 }
  0x33   :  { %250 = vmatprep.subr.bf16.mxu0 %v351_v0 }
  0x34   :  { %p327_p6 = pnand %p326_p5, %p320_p2 }
  0x36   :  { %252 = vmatpush3.bf16.msra.mxu0 %v251_v13 }
  0x37   :  { %253 = vmatprep.subr.bf16.mxu0 %v351_v0 }
  0x3a   :  { %255 = vmatpush3.bf16.msra.mxu0 %v254_v16 }
  0x3b   :  { %256 = vmatprep.subr.bf16.mxu0 %v351_v0 }
  0x3e   :  { %258 = vmatpush3.bf16.msra.mxu0 %v257_v19 }
  0x3f   :  { %259 = vmatprep.subr.bf16.mxu0 %v351_v0 }
  0x42   :  { %261 = vmatpush3.bf16.msra.mxu0 %v260_v22 }
  0x43   :  { %262 = vmatprep.subr.bf16.mxu0 %v351_v0 }
  0x46   :  { %264 = vmatpush3.bf16.msra.mxu0 %v263_v25 }
  0x49   :  { %239 = vmatmul.mubr.f32.vlgmr.msra.gmra.mrb[0].mxu0 %v51_v26 }
 0x11c   :  { %v134_v28 = vpop.f32.mrb[0].mxu0 }
 0x11d   :  { %v151_v29 = vadd.f32 %v188_v27, %v134_v28  ;;  %v240_v30 = vpop.f32.mrb[1].mxu0 }
 0x11f   :  { %152 = vadd.xlane.f32.xlu0 %v151_v29  ;;  %v154_v31 = vmul.f32 %v151_v29, %v151_v29 }
 0x123   :  { %155 = vadd.xlane.f32.xlu0 %v154_v31 }
 0x1ac   :  { %v153_v32 = vpop.xlane.xlu0 %152 }
 0x1ad   :  { %v157_v33 = vmul.f32 0.03125, %v153_v32 }
 0x1af   :  { %v159_v35 = vmul.f32 %v157_v33, %v157_v33  ;;  %v162_v40 = vsub.f32 %v151_v29, %v157_v33 }
 0x1b0   :  { %v156_v34 = vpop.xlane.xlu0 %155 }
 0x1b1   :  { %v158_v36 = vmul.f32 0.03125, %v156_v34 }
 0x1b3   :  { %v160_v37 = vsub.f32 %v158_v36, %v159_v35 }
 0x1b5   :  { %v161_v38 = vmax.f32 %v160_v37, 0.0 }
 0x1b7   :  { %v163_v39 = vadd.f32 1e-05, %v161_v38 }
 0x1b9   :  { %273 = vrsqrt.f32 %v163_v39 }
 0x1c3   :  { %v274_v41 = vpop.eup %273 }
 0x1c4   :  { %v165_v43 = vmul.f32 %v274_v41, %v162_v40 }
 0x1c6   :  { %vm167_vm1 = vcmp.ge.f32.partialorder %v165_v43, 0.0  ;;  %v169_v44 = vmul.f32 %v168_v42, %v165_v43 }
 0x1c8   :  { %v170_v45 = vsel %vm167_vm1, %v165_v43, %v169_v44 }
 0x1c9   :  { %171 = vst [vmem:[#allocation9] sm:$0xff] %v170_v45 }
 0x1ca   :  { %330 = shalt.err (!%p327_p6)
}
 0x1cb   :  { %s331_s21 = scalar_lea.hbm %s433_s4, 128 }
 0x1cc   :  { %p332_p7 = scmp.ne.s32.totalorder %s433_s4, %s331_s21  ;;  %p335_p8 = scmp.lt.u32.totalorder %s331_s21, %s433_s4 }
 0x1ce   :  { %p337_p9 = pnand %p335_p8, %p332_p7 }
 0x1d0   :  { %340 = shalt.err (!%p337_p9)
}
 0x1d1   :  { %181 = dma.vmem_to_hbm [thread:$0]  %s179_s17, 128, %s433_s4, [#allocation6]  }
 0x1d2   :  { %345 = dma.done.wait [#allocation6], 128  }
 0x1d3   :  { %346 = vsyncadd [#allocation6], 4294967168 }
 0x1d4   :  { %185 = vsyncpa [#allocation5], 1 }
 0x1d5   :  { %186 = vsyncpa [#allocation8], 1 }
 0x1d6   :  { %187 = vsyncpa [#allocation6], 1 }

</bundles_post_ra>
